<compile_context>
chip_gen: v5e
topology: v5e:2x2
jax: 0.10.0
libtpu: 0.0.40
codegen_flags: <defaults>
</compile_context>

<pallas_src>
import jax
import jax.numpy as jnp
from jax.experimental import pallas as pl
from jax.experimental.pallas import tpu as pltpu

_WIDTHS = (1024, 896, 768, 640, 512, 384, 256, 128)  # lane-dense slab widths
_TARGET_ROWS = 512  # 512 x 1024 f32 = 2 MiB / block buffer -> 8 MiB with
                    # double-buffered in+out: safe on v5e's 16 MiB scoped-VMEM
                    # default; v6e/v7x (32 MiB) have even more headroom.


def _round_up(x, m):
    return -(-x // m) * m


def _sublane_multiple(dtype):
    # Minimum native second-minor tile: 8 (32-bit), 16 (16-bit), 32 (8-bit).
    return {4: 8, 2: 16, 1: 32}.get(jnp.dtype(dtype).itemsize, 8)


def _fun_kernel(c_ref, y_ref, o_ref):
    # o = c * (sin(y) - y)  -- one sin + one sub + one mul, computed in f32.
    # NOTE(v7x): if jnp.sin lowers to a VALU range-reduction polynomial this
    # kernel may flip from HBM-bound to VALU-bound at ~3.2 TB/s; the lever
    # there is a cheaper sin / bf16 compute, not further tiling/DMA work.
    c = c_ref[0]
    y = y_ref[...].astype(jnp.float32)
    o_ref[...] = (c * (jnp.sin(y) - y)).astype(o_ref.dtype)


def fun_forward(t, y, c=1.0, *, donate=False):
    """JAX/Pallas equivalent of Fun.forward(t, y) = -c*y + c*sin(y).

    `t` is accepted for API parity with the PyTorch module but is unused,
    exactly as in the reference forward pass.  `c` may be a Python number or
    a traced JAX scalar.  `donate=True` aliases y's buffer to the output
    (in-place semantics; only use when the caller can donate y).
    """
    del t  # unused by the math, same as the PyTorch module

    orig_shape, orig_dtype = y.shape, y.dtype
    total = y.size
    if total == 0:
        return y

    # ---- pick a lane-dense slab (rows, width); zero-copy whenever possible --
    width = None
    for w in _WIDTHS:
        if total % w == 0:
            width = w
            break

    flat = y.reshape(-1)
    if width is None:
        # Ragged element count: pad the (< 1024-element) tail and trim after.
        # TODO(synk): split main/tail to avoid the full-array pad copy here.
        width = _WIDTHS[0]
        padded_total = _round_up(total, width)
        flat = jnp.pad(flat, (0, padded_total - total))
        padded = True
    else:
        padded_total = total
        padded = False

    rows = padded_total // width
    y2d = flat.reshape(rows, width)

    # ---- block rows ---------------------------------------------------------
    sub = _sublane_multiple(orig_dtype)
    if rows <= sub:
        # Single full-array block: block dims == array dims, so the
        # (sublane, 128) divisibility rule does not apply.
        block_rows = rows
    else:
        # Aim for >= 2 grid steps (lets v7x shard the "parallel" axis across
        # both TensorCores), capped at _TARGET_ROWS.  The last block may be
        # partial; Pallas masks the overhang writes and the garbage reads are
        # harmless for an elementwise op.
        block_rows = min(_TARGET_ROWS, _round_up(-(-rows // 2), sub))
    grid_m = -(-rows // block_rows)

    c_arr = jnp.asarray(c, dtype=jnp.float32).reshape((1,))

    out2d = pl.pallas_call(
        _fun_kernel,
        out_shape=jax.ShapeDtypeStruct((rows, width), orig_dtype),
        grid_spec=pltpu.PrefetchScalarGridSpec(
            num_scalar_prefetch=1,  # c lives in SMEM, read once per step
            grid=(grid_m,),
            in_specs=[pl.BlockSpec((block_rows, width), lambda i, c_ref: (i, 0))],
            out_specs=pl.BlockSpec((block_rows, width), lambda i, c_ref: (i, 0)),
        ),
        compiler_params=pltpu.CompilerParams(
            dimension_semantics=("parallel",),
        ),
        # operand 0 is the prefetched scalar c, operand 1 is y2d.
        input_output_aliases=({1: 0} if donate else {}),
    )(c_arr, y2d)

    if padded:
        return out2d.reshape(-1)[:total].reshape(orig_shape)
    return out2d.reshape(orig_shape)


if __name__ == "__main__":
    key = jax.random.PRNGKey(0)
    k1, k2, k3 = jax.random.split(key, 3)
    t = jnp.float32(0.0)

    def ref(y, c):
        return -c * y + c * jnp.sin(y)

    # (1) Module-shaped input (B, C, H, W) = (2, 4, 16, 16):
    #     2048 elems -> zero-copy path, single full-array block.
    c = 1.0
    y1 = jax.random.normal(k1, (2, 4, 16, 16), dtype=jnp.float32)
    o1 = jax.block_until_ready(fun_forward(t, y1, c=c))
    assert o1.shape == y1.shape and o1.dtype == y1.dtype
    assert jnp.allclose(o1, ref(y1, c), atol=1e-6, rtol=1e-6)

    # (2) Multi-block path with a partial last block (rows=10, block=8, grid=2).
    y2 = jax.random.normal(k2, (10, 1024), dtype=jnp.float32)
    o2 = jax.block_until_ready(fun_forward(t, y2, c=0.5))
    assert jnp.allclose(o2, ref(y2, 0.5), atol=1e-6, rtol=1e-6)

    # (3) Ragged element count (3*5*7 = 105 elems) -> pad/trim fallback path.
    y3 = jax.random.normal(k3, (3, 5, 7), dtype=jnp.float32)
    o3 = jax.block_until_ready(fun_forward(t, y3, c=2.0))
    assert jnp.allclose(o3, ref(y3, 2.0), atol=1e-6, rtol=1e-6)

    print("KERNEL_OK")
</pallas_src>

<mosaic_0001>
module attributes {stable_mosaic.version = 11 : i64} {
  func.func @_fun_kernel(%arg0: i32, %arg1: memref<1xf32, #tpu.memory_space<smem>>, %arg2: memref<2x1024xf32, #tpu.memory_space<vmem>>, %arg3: memref<2x1024xf32, #tpu.memory_space<vmem>>) attributes {dimension_semantics = [#tpu.dimension_semantics<parallel>], iteration_bounds = array<i64: 1>, scalar_prefetch = 1 : i64, scratch_operands = 0 : i64, tpu.core_type = #tpu.core_type<tc>, window_params = [{transform_indices = @transform_0, window_bounds = array<i64: 2, 1024>}, {transform_indices = @transform_1, window_bounds = array<i64: 2, 1024>}]} {
    %c0 = arith.constant 0 : index
    %0 = memref.load %arg1[%c0] : memref<1xf32, #tpu.memory_space<smem>>
    %c0_0 = arith.constant 0 : index
    %c0_1 = arith.constant 0 : index
    %1 = vector.load %arg2[%c0_0, %c0_1] : memref<2x1024xf32, #tpu.memory_space<vmem>>, vector<2x1024xf32>
    %2 = math.sin %1 : vector<2x1024xf32>
    %3 = arith.subf %2, %1 : vector<2x1024xf32>
    %4 = vector.broadcast %0 : f32 to vector<2x1024xf32>
    %5 = arith.mulf %4, %3 : vector<2x1024xf32>
    %c0_2 = arith.constant 0 : index
    %c0_3 = arith.constant 0 : index
    %6 = vector.load %arg3[%c0_2, %c0_3] : memref<2x1024xf32, #tpu.memory_space<vmem>>, vector<2x1024xf32>
    tpu.vector_store %arg3[%c0_2, %c0_3], %5 {strides = array<i32>} : memref<2x1024xf32, #tpu.memory_space<vmem>>, vector<2x1024xf32>,
    return
  }
  func.func @transform_0(%arg0: i32, %arg1: memref<1xf32, #tpu.memory_space<smem>>) -> (i32, i32) {
    %c0_i32 = arith.constant 0 : i32
    %c0_i32_0 = arith.constant 0 : i32
    return %arg0, %c0_i32 : i32, i32
  }
  func.func @transform_1(%arg0: i32, %arg1: memref<1xf32, #tpu.memory_space<smem>>) -> (i32, i32) {
    %c0_i32 = arith.constant 0 : i32
    %c0_i32_0 = arith.constant 0 : i32
    return %arg0, %c0_i32 : i32, i32
  }
}

</mosaic_0001>

<bundles_post_ra>
// kernel: tpu_custom_call.1
= control target key start
LH: loop header
LB: loop body
LE: loop exit
PB: predicated region body
PF: predicated region fallthrough
CT: control target
= control target key end

     0   :  { %8 = vsyncpa [#allocation5], 0  ;;  %s637_s0 = inlined_call_operand.<no memory space> [shape: f32[1], index: 0, kind: input, shape index: {}]   ;;  %s638_s1 = inlined_call_operand.hbm [shape: f32[2,1024], index: 1, kind: input, shape index: {}]   ;;  %s639_s2 = inlined_call_operand.hbm [shape: f32[2,1024], index: 2, kind: output, shape index: {}]  }
   0x1   :  { %9 = vsyncpa [#allocation6], 0  ;;  %s15_s11 = sshll.u32 %s638_s1, 4  ;;  %s429_s12 = smov [#allocation4]   ;;  %s16_s11 = int_to_ptr.hbm [resolvable:$true] %s15_s11 }
   0x2   :  { %s17_s13 = sshll.u32 %s429_s12, 4  ;;  %s18_s13 = int_to_ptr.vmem [resolvable:$true] %s17_s13 }
   0x3   :  { %20 = dma.hbm_to_vmem [thread:$0]  %s16_s11, 256, %s18_s13, [#allocation5]  }
   0x4   :  { %425 = dma.done.wait [#allocation5], 256  }
   0x5   :  { %426 = vsyncadd [#allocation5], 4294967040  ;;  %v456_v0 = vld [vmem:[#allocation4] sm:$0xff]  ;;  %v458_v1 = vld [vmem:[#allocation4 + $0x8] sm:$0xff]  ;;  %v430_v23 = vmov 683565275  }
   0x6   :  { %v28_v2 = vand.u32 2147483647, %v456_v0  ;;  %v31_v3 = vand.u32 2139095040, %v456_v0  ;;  %v183_v4 = vand.u32 2147483647, %v458_v1  ;;  %v186_v5 = vand.u32 2139095040, %v458_v1 }
   0x7   :  { %v431_v25 = vmov 2475754826   ;;  %v432_v27 = vmov 2131351028   ;;  %v433_v29 = vmov 2102212464  }
   0x8   :  { %v32_v6 = vshrl.u32 %v31_v3, 23  ;;  %v35_v7 = vand.u32 8388607, %v28_v2  ;;  %v187_v8 = vshrl.u32 %v186_v5, 23  ;;  %v190_v12 = vand.u32 8388607, %v183_v4 }
   0x9   :  { %v434_v31 = vmov 920167782   ;;  %v435_v40 = vmov 1326507024   ;;  %s352_s18 = sshll.u32 %s639_s2, 4  ;;  %s353_s18 = int_to_ptr.hbm [resolvable:$true] %s352_s18 }
   0xa   :  { %v362_v9 = vadd.s32 4294967169, %v32_v6  ;;  %v36_v10 = vor.u32 8388608, %v35_v7  ;;  %v365_v11 = vadd.s32 4294967169, %v187_v8  ;;  %v191_v17 = vor.u32 8388608, %v190_v12 }
   0xc   :  { %v38_v13 = vadd.s32 1, %v362_v9  ;;  %v193_v14 = vadd.s32 1, %v365_v11  ;;  %v468_v16 = vshll.u32 %v36_v10, 8  ;;  %v478_v34 = vshll.u32 %v191_v17, 8 }
   0xe   :  { %vm39_vm0 = vcmp.gt.s32.totalorder %v38_v13, 0  ;;  %vm194_vm1 = vcmp.gt.s32.totalorder %v193_v14, 0  ;;  %v77_v33 = vand.u32 65535, %v468_v16  ;;  %v78_v38 = vshrl.u32 %v468_v16, 16 }
   0xf   :  { %v40_v15 = vsel %vm39_vm0, %v38_v13, 0  ;;  %v195_v19 = vsel %vm194_vm1, %v193_v14, 0 }
  0x10   :  { %v42_v18 = vand.u32 31, %v40_v15  ;;  %v470_v20 = vshrl.u32 %v40_v15, 5  ;;  %v472_v21 = vand.u32 31, %v195_v19  ;;  %v496_v51 = vshrl.u32 %v195_v19, 5 }
  0x12   :  { %v43_v22 = vsub.s32 32, %v42_v18  ;;  %v45_v24 = vshll.u32 %v430_v23, %v42_v18  ;;  %v48_v26 = vshll.u32 %v431_v25, %v42_v18  ;;  %v51_v28 = vshll.u32 %v432_v27, %v42_v18 }
  0x13   :  { %v54_v30 = vshll.u32 %v433_v29, %v42_v18  ;;  %v57_v32 = vshll.u32 %v434_v31, %v42_v18  ;;  %vm60_vm2 = vcmp.lt.s32.totalorder %v470_v20, 1  ;;  %vm63_vm3 = vcmp.lt.s32.totalorder %v470_v20, 4 }
  0x14   :  { %v46_v35 = vshrl.u32 %v431_v25, %v43_v22  ;;  %v49_v36 = vshrl.u32 %v432_v27, %v43_v22  ;;  %v52_v37 = vshrl.u32 %v433_v29, %v43_v22  ;;  %v55_v39 = vshrl.u32 %v434_v31, %v43_v22 }
  0x15   :  { %v58_v41 = vshrl.u32 %v435_v40, %v43_v22  ;;  %v487_v45 = vsub.s32 32, %v472_v21  ;;  %v44_v46 = vshrl.u32 %v430_v23, %v43_v22  ;;  %vm62_vm4 = vcmp.lt.s32.totalorder %v470_v20, 3 }
  0x16   :  { %v47_v42 = vor.u32 %v46_v35, %v45_v24  ;;  %v50_v43 = vor.u32 %v49_v36, %v48_v26  ;;  %v53_v44 = vor.u32 %v52_v37, %v51_v28  ;;  %v56_v47 = vor.u32 %v55_v39, %v54_v30 }
  0x17   :  { %v59_v48 = vor.u32 %v58_v41, %v57_v32  ;;  %vm61_vm5 = vcmp.lt.s32.totalorder %v470_v20, 2  ;;  %v200_v54 = vshll.u32 %v430_v23, %v472_v21  ;;  %v203_v55 = vshll.u32 %v431_v25, %v472_v21 }
  0x18   :  { %v68_v49 = vsel %vm60_vm2, %v47_v42, %v50_v43  ;;  %v72_v50 = vsel %vm60_vm2, %v50_v43, %v53_v44  ;;  %v69_v52 = vsel %vm63_vm3, %v56_v47, 920167782  ;;  %v65_v56 = vsel %vm63_vm3, %v53_v44, 2102212464 }
  0x19   :  { %v73_v53 = vsel %vm63_vm3, %v59_v48, 1326507024  ;;  %v70_v57 = vsel %vm62_vm4, %v53_v44, %v69_v52  ;;  %v201_v59 = vshrl.u32 %v431_v25, %v487_v45  ;;  %v64_v60 = vsel %vm60_vm2, %v44_v46, %v47_v42 }
  0x1a   :  { %v74_v58 = vsel %vm62_vm4, %v56_v47, %v73_v53  ;;  %v71_v61 = vsel %vm61_vm5, %v68_v49, %v70_v57  ;;  %v204_v63 = vshrl.u32 %v432_v27, %v487_v45  ;;  %v66_v8 = vsel %vm62_vm4, %v50_v43, %v65_v56 }
  0x1b   :  { %v75_v62 = vsel %vm61_vm5, %v72_v50, %v74_v58  ;;  %v101_v6 = vand.u32 65535, %v71_v61  ;;  %v102_v7 = vshrl.u32 %v71_v61, 16  ;;  %v521_v9 = vor.u32 %v201_v59, %v200_v54 }
  0x1c   :  { %v79_v3 = vand.u32 65535, %v75_v62  ;;  %v80_v5 = vshrl.u32 %v75_v62, 16  ;;  %v523_v10 = vor.u32 %v204_v63, %v203_v55  ;;  %v206_v11 = vshll.u32 %v432_v27, %v472_v21 }
  0x1d   :  { %v207_v15 = vshrl.u32 %v433_v29, %v487_v45  ;;  %v103_v18 = vmul.u32 %v101_v6, %v77_v33  ;;  %v104_v19 = vmul.u32 %v102_v7, %v77_v33  ;;  %v105_v22 = vmul.u32 %v101_v6, %v78_v38 }
  0x1e   :  { %v81_v12 = vmul.u32 %v79_v3, %v77_v33  ;;  %v82_v13 = vmul.u32 %v80_v5, %v77_v33  ;;  %v83_v14 = vmul.u32 %v79_v3, %v78_v38  ;;  %v84_v17 = vmul.u32 %v80_v5, %v78_v38 }
  0x1f   :  { %v106_v28 = vmul.u32 %v102_v7, %v78_v38  ;;  %v107_v32 = vshll.u32 %v104_v19, 16  ;;  %v108_v35 = vshrl.u32 %v104_v19, 16  ;;  %v109_v36 = vshll.u32 %v105_v22, 16 }
  0x20   :  { %v85_v24 = vshll.u32 %v82_v13, 16  ;;  %v86_v25 = vshrl.u32 %v82_v13, 16  ;;  %v87_v26 = vshll.u32 %v83_v14, 16  ;;  %v88_v30 = vshrl.u32 %v83_v14, 16 }
  0x21   :  { %v110_v37 = vshrl.u32 %v105_v22, 16  ;;  %v209_v39 = vshll.u32 %v433_v29, %v472_v21  ;;  %v436_v41 = vmov 0   ;;  %vm111_vm7 = vc.u32 %v103_v18, %v107_v32 }
  0x22   :  { %vm89_vm6 = vc.u32 %v81_v12, %v85_v24  ;;  %v91_v27 = vadd.s32 %v85_v24, %v81_v12  ;;  %v113_v33 = vadd.s32 %v107_v32, %v103_v18  ;;  %v210_v43 = vshrl.u32 %v434_v31, %v487_v45 }
  0x23   :  { %v90_v42 = vsel %vm89_vm6, 1, %v436_v41  ;;  %v112_v38 = vsel %vm111_vm7, 1, %v436_v41  ;;  %v212_v46 = vshll.u32 %v434_v31, %v472_v21  ;;  %v208_v29 = vor.u32 %v207_v15, %v206_v11 }
  0x24   :  { %v92_v44 = vadd.s32 %v90_v42, %v84_v17  ;;  %vm93_vm8 = vc.u32 %v91_v27, %v87_v26  ;;  %v114_v48 = vadd.s32 %v112_v38, %v106_v28  ;;  %vm115_vm9 = vc.u32 %v113_v33, %v109_v36 }
  0x25   :  { %v94_v47 = vsel %vm93_vm8, 1, %v436_v41  ;;  %v116_v50 = vsel %vm115_vm9, 1, %v436_v41  ;;  %v211_v52 = vor.u32 %v210_v43, %v209_v39  ;;  %v213_v53 = vshrl.u32 %v435_v40, %v487_v45 }
  0x26   :  { %v96_v49 = vadd.s32 %v94_v47, %v92_v44  ;;  %v540_v54 = vadd.s32 %v113_v33, %v109_v36  ;;  %v118_v55 = vadd.s32 %v116_v50, %v114_v48  ;;  %vm215_vm10 = vcmp.lt.s32.totalorder %v496_v51, 1 }
  0x27   :  { %vm217_vm11 = vcmp.lt.s32.totalorder %v496_v51, 3  ;;  %v214_v31 = vor.u32 %v213_v53, %v212_v46  ;;  %vm216_vm12 = vcmp.lt.s32.totalorder %v496_v51, 2  ;;  %vm218_vm13 = vcmp.lt.s32.totalorder %v496_v51, 4 }
  0x28   :  { %v97_v21 = vadd.s32 %v96_v49, %v86_v25  ;;  %v67_v56 = vsel %vm61_vm5, %v64_v60, %v66_v8  ;;  %v119_v57 = vadd.s32 %v118_v55, %v108_v35  ;;  %v223_v40 = vsel %vm215_vm10, %v521_v9, %v523_v10 }
  0x29   :  { %v224_v58 = vsel %vm218_vm13, %v211_v52, 920167782  ;;  %v227_v62 = vsel %vm215_vm10, %v523_v10, %v208_v29  ;;  %v232_v20 = vand.u32 65535, %v478_v34  ;;  %v228_v3 = vsel %vm218_vm13, %v214_v31, 1326507024 }
  0x2a   :  { %v554_v59 = vadd.s32 %v97_v21, %v88_v30  ;;  %v225_v61 = vsel %vm217_vm11, %v208_v29, %v224_v58  ;;  %v120_v60 = vadd.s32 %v119_v57, %v110_v37  ;;  %v233_v5 = vshrl.u32 %v478_v34, 16 }
  0x2b   :  { %v226_v63 = vsel %vm216_vm12, %v223_v40, %v225_v61  ;;  %v121_v6 = vmul.u32 %v468_v16, %v67_v56  ;;  %v229_v7 = vsel %vm217_vm11, %v211_v52, %v228_v3  ;;  %v199_v18 = vshrl.u32 %v430_v23, %v487_v45 }
  0x2c   :  { %vm123_vm14 = vc.u32 %v554_v59, %v540_v54  ;;  %v256_v8 = vand.u32 65535, %v226_v63  ;;  %v124_v11 = vadd.s32 1, %v120_v60  ;;  %v230_v12 = vsel %vm216_vm12, %v227_v62, %v229_v7 }
  0x2d   :  { %v257_v13 = vshrl.u32 %v226_v63, 16  ;;  %v234_v14 = vand.u32 65535, %v230_v12  ;;  %v235_v15 = vshrl.u32 %v230_v12, 16  ;;  %v220_v35 = vsel %vm218_vm13, %v208_v29, 2102212464 }
  0x2e   :  { %v125_v17 = vsel %vm123_vm14, %v124_v11, %v120_v60  ;;  %v260_v16 = vmul.u32 %v256_v8, %v233_v5  ;;  %v258_v26 = vmul.u32 %v256_v8, %v232_v20  ;;  %v219_v37 = vsel %vm215_vm10, %v199_v18, %v521_v9 }
  0x2f   :  { %v259_v19 = vmul.u32 %v257_v13, %v232_v20  ;;  %v126_v22 = vadd.s32 %v125_v17, %v121_v6  ;;  %v236_v24 = vmul.u32 %v234_v14, %v232_v20  ;;  %v237_v25 = vmul.u32 %v235_v15, %v232_v20 }
  0x30   :  { %v238_v28 = vmul.u32 %v234_v14, %v233_v5  ;;  %v239_v36 = vmul.u32 %v235_v15, %v233_v5  ;;  %v261_v23 = vmul.u32 %v257_v13, %v233_v5  ;;  %v264_v45 = vshll.u32 %v260_v16, 16 }
  0x31   :  { %v262_v30 = vshll.u32 %v259_v19, 16  ;;  %v127_v32 = vadd.s32 536870912, %v126_v22  ;;  %v240_v27 = vshll.u32 %v237_v25, 16  ;;  %v221_v43 = vsel %vm217_vm11, %v523_v10, %v220_v35 }
  0x32   :  { %v242_v39 = vshll.u32 %v238_v28, 16  ;;  %v241_v9 = vshrl.u32 %v237_v25, 16  ;;  %v263_v49 = vshrl.u32 %v259_v19, 16  ;;  %v243_v53 = vshrl.u32 %v238_v28, 16 }
  0x33   :  { %v581_v42 = vshrl.u32 %v127_v32, 30  ;;  %vm244_vm15 = vc.u32 %v236_v24, %v240_v27  ;;  %v246_v33 = vadd.s32 %v240_v27, %v236_v24  ;;  %vm266_vm0 = vc.u32 %v258_v26, %v262_v30 }
  0x34   :  { %v245_v44 = vsel %vm244_vm15, 1, %v436_v41  ;;  %v267_v38 = vsel %vm266_vm0, 1, %v436_v41  ;;  %v268_v46 = vadd.s32 %v262_v30, %v258_v26  ;;  %v265_v21 = vshrl.u32 %v260_v16, 16 }
  0x35   :  { %v129_v47 = vshll.u32 %v581_v42, 30  ;;  %v247_v48 = vadd.s32 %v245_v44, %v239_v36  ;;  %vm248_vm1 = vc.u32 %v246_v33, %v242_v39  ;;  %v269_v50 = vadd.s32 %v267_v38, %v261_v23 }
  0x36   :  { %v249_v29 = vsel %vm248_vm1, 1, %v436_v41  ;;  %vm270_vm2 = vc.u32 %v268_v46, %v264_v45  ;;  %v272_v40 = vadd.s32 %v268_v46, %v264_v45  ;;  %v222_v58 = vsel %vm216_vm12, %v219_v37, %v221_v43 }
  0x37   :  { %v130_v52 = vsub.s32 %v126_v22, %v129_v47  ;;  %v251_v55 = vadd.s32 %v249_v29, %v247_v48  ;;  %v271_v10 = vsel %vm270_vm2, 1, %v436_v41  ;;  %v276_v3 = vmul.u32 %v478_v34, %v222_v58 }
  0x38   :  { %v273_v31 = vadd.s32 %v271_v10, %v269_v50  ;;  %v122_v41 = vadd.s32 %v540_v54, %v554_v59  ;;  %v152_v28 = vsub.s32 4, %v581_v42  ;;  %vm30_vm7 = vcmp.lt.s32.totalorder %v456_v0, 0 }
  0x39   :  { %vm131_vm3 = vcmp.lt.s32.totalorder %v130_v52, 0  ;;  %v132_v56 = vsub.s32 0, %v130_v52  ;;  %v252_v57 = vadd.s32 %v251_v55, %v241_v9  ;;  %vm603_vm8 = vcmp.le.f32.partialorder %v28_v2, 0.7853982 }
  0x3a   :  { %v274_v61 = vadd.s32 %v273_v31, %v263_v49  ;;  %v153_v37 = vsel %vm30_vm7, %v152_v28, %v581_v42  ;;  %vm185_vm11 = vcmp.lt.s32.totalorder %v458_v1, 0  ;;  %vm617_vm13 = vcmp.le.f32.partialorder %v183_v4, 0.7853982 }
  0x3b   :  { %v133_v62 = vsel %vm131_vm3, %v132_v56, %v130_v52  ;;  %v253_v20 = vadd.s32 %v252_v57, %v243_v53  ;;  %v155_v43 = vsel %vm603_vm8, 0, %v153_v37  ;;  %vm171_vm15 = vweird.f32 %v456_v0 }
  0x3c   :  { %v134_v60 = vclz %v133_v62  ;;  %v275_v63 = vadd.s32 %v274_v61, %v265_v21  ;;  %v172_v49 = vadd.s32 3, %v155_v43  ;;  %vm326_vm3 = vweird.f32 %v458_v1 }
  0x3d   :  { %vm278_vm4 = vc.u32 %v253_v20, %v272_v40  ;;  %v277_v33 = vadd.s32 %v272_v40, %v253_v20 }
  0x3e   :  { %v363_v5 = vadd.s32 4294967294, %v134_v60  ;;  %v279_v6 = vadd.s32 1, %v275_v63  ;;  %v173_v56 = vand.u32 3, %v172_v49 }
  0x40   :  { %vm364_vm5 = vcmp.lt.s32.totalorder %v363_v5, 0  ;;  %v280_v7 = vsel %vm278_vm4, %v279_v6, %v275_v63  ;;  %vm178_vm10 = vcmp.eq.s32.totalorder %v173_v56, 2  ;;  %vm175_vm12 = vcmp.eq.s32.totalorder %v173_v56, 0 }
  0x41   :  { %v137_v8 = vsel %vm364_vm5, 0, %v363_v5  ;;  %v281_v11 = vadd.s32 %v280_v7, %v276_v3  ;;  %vm174_vm14 = vcmp.lt.s32.totalorder %v173_v56, 2 }
  0x42   :  { %v138_v12 = vsub.s32 32, %v137_v8  ;;  %v139_v51 = vshll.u32 %v130_v52, %v137_v8  ;;  %v142_v13 = vsub.s32 4294967266, %v137_v8 }
  0x43   :  { %v282_v14 = vadd.s32 536870912, %v281_v11 }
  0x44   :  { %v140_v15 = vshrl.u32 %v122_v41, %v138_v12  ;;  %v143_v17 = vadd.s32 127, %v142_v13 }
  0x45   :  { %v596_v18 = vshrl.u32 %v282_v14, 30 }
  0x46   :  { %v141_v19 = vor.u32 %v140_v15, %v139_v51  ;;  %v144_v34 = vshll.u32 %v143_v17, 23 }
  0x47   :  { %v284_v16 = vshll.u32 %v596_v18, 30  ;;  %v307_v6 = vsub.s32 4, %v596_v18 }
  0x48   :  { %v145_v22 = vor.u32 4788187, %v144_v34  ;;  %v148_v24 = vcvt.s32.f32 %v141_v19  ;;  %v340_v19 = vstv %s637_s0  ;;  %s437_s0 = smov [#allocation7]  }
  0x49   :  { %v285_v25 = vsub.s32 %v281_v11, %v284_v16  ;;  %v308_v13 = vsel %vm185_vm11, %v307_v6, %v596_v18  ;;  %s350_s15 = sshll.u32 %s437_s0, 4  ;;  %s351_s15 = int_to_ptr.vmem [resolvable:$true] %s350_s15 }
  0x4a   :  { %v146_v54 = vand.u32 2147483647, %v145_v22  ;;  %v310_v34 = vsel %vm617_vm13, 0, %v308_v13 }
  0x4b   :  { %vm286_vm6 = vcmp.lt.s32.totalorder %v285_v25, 0  ;;  %v287_v59 = vsub.s32 0, %v285_v25 }
  0x4c   :  { %v149_v26 = vmul.f32 %v148_v24, %v146_v54 }
  0x4d   :  { %v288_v30 = vsel %vm286_vm6, %v287_v59, %v285_v25  ;;  %v327_v59 = vadd.s32 3, %v310_v34 }
  0x4e   :  { %v150_v35 = vxor.u32 2147483648, %v149_v26  ;;  %v289_v36 = vclz %v288_v30 }
  0x50   :  { %v151_v27 = vsel %vm30_vm7, %v150_v35, %v149_v26  ;;  %v366_v39 = vadd.s32 4294967294, %v289_v36  ;;  %v328_v35 = vand.u32 3, %v327_v59 }
  0x51   :  { %v154_v23 = vsel %vm603_vm8, %v456_v0, %v151_v27 }
  0x52   :  { %v156_v45 = vmul.f32 %v154_v23, %v154_v23  ;;  %vm367_vm9 = vcmp.lt.s32.totalorder %v366_v39, 0  ;;  %vm333_vm0 = vcmp.eq.s32.totalorder %v328_v35, 2  ;;  %vm330_vm1 = vcmp.eq.s32.totalorder %v328_v35, 0 }
  0x53   :  { %v292_v2 = vsel %vm367_vm9, 0, %v366_v39  ;;  %vm329_vm2 = vcmp.lt.s32.totalorder %v328_v35, 2 }
  0x54   :  { %v157_v44 = vmul.f32 -0.001358992, %v156_v45  ;;  %v164_v38 = vmul.f32 -0.00019511016, %v156_v45  ;;  %v293_v46 = vsub.s32 32, %v292_v2  ;;  %v294_v47 = vshll.u32 %v285_v25, %v292_v2 }
  0x55   :  { %v297_v9 = vsub.s32 4294967266, %v292_v2 }
  0x56   :  { %v158_v48 = vadd.f32 0.041655596, %v157_v44  ;;  %v165_v29 = vadd.f32 0.008332121, %v164_v38  ;;  %v295_v42 = vshrl.u32 %v277_v33, %v293_v46 }
  0x57   :  { %v298_v50 = vadd.s32 127, %v297_v9 }
  0x58   :  { %v159_v52 = vmul.f32 %v158_v48, %v156_v45  ;;  %v166_v53 = vmul.f32 %v165_v29, %v156_v45  ;;  %v296_v55 = vor.u32 %v295_v42, %v294_v47 }
  0x59   :  { %v299_v10 = vshll.u32 %v298_v50, 23 }
  0x5a   :  { %v160_v21 = vadd.f32 -0.4999988, %v159_v52  ;;  %v167_v31 = vadd.f32 -0.16666654, %v166_v53  ;;  %v303_v40 = vcvt.s32.f32 %v296_v55 }
  0x5b   :  { %v300_v57 = vor.u32 4788187, %v299_v10 }
  0x5c   :  { %v161_v58 = vmul.f32 %v160_v21, %v156_v45  ;;  %v168_v61 = vmul.f32 %v167_v31, %v156_v45 }
  0x5d   :  { %v301_v62 = vand.u32 2147483647, %v300_v57 }
  0x5e   :  { %v162_v20 = vadd.f32 1.0, %v161_v58  ;;  %v169_v60 = vadd.f32 1.0, %v168_v61 }
  0x5f   :  { %v304_v63 = vmul.f32 %v303_v40, %v301_v62 }
  0x60   :  { %v170_v3 = vmul.f32 %v169_v60, %v154_v23  ;;  %v179_v5 = vxor.u32 2147483648, %v162_v20 }
  0x61   :  { %v305_v7 = vxor.u32 2147483648, %v304_v63 }
  0x62   :  { %v176_v8 = vxor.u32 2147483648, %v170_v3  ;;  %v180_v11 = vsel %vm178_vm10, %v179_v5, %v170_v3 }
  0x63   :  { %v306_v12 = vsel %vm185_vm11, %v305_v7, %v304_v63 }
  0x64   :  { %v177_v51 = vsel %vm175_vm12, %v162_v20, %v176_v8  ;;  %v309_v14 = vsel %vm617_vm13, %v458_v1, %v306_v12 }
  0x65   :  { %v181_v15 = vsel %vm174_vm14, %v177_v51, %v180_v11  ;;  %v311_v17 = vmul.f32 %v309_v14, %v309_v14 }
  0x66   :  { %v182_v4 = vsel %vm171_vm15, nan, %v181_v15 }
  0x67   :  { %v312_v16 = vmul.f32 -0.001358992, %v311_v17  ;;  %v319_v22 = vmul.f32 -0.00019511016, %v311_v17  ;;  %v338_v24 = vsub.f32 %v182_v4, %v456_v0 }
  0x69   :  { %v313_v25 = vadd.f32 0.041655596, %v312_v16  ;;  %v320_v18 = vadd.f32 0.008332121, %v319_v22  ;;  %v341_v54 = vmul.f32 %v340_v19, %v338_v24 }
  0x6b   :  { %v314_v26 = vmul.f32 %v313_v25, %v311_v17  ;;  %v321_v28 = vmul.f32 %v320_v18, %v311_v17  ;;  %343 = vst [vmem:[#allocation7] sm:$0xff] %v341_v54 }
  0x6d   :  { %v315_v30 = vadd.f32 -0.4999988, %v314_v26  ;;  %v322_v32 = vadd.f32 -0.16666654, %v321_v28 }
  0x6f   :  { %v316_v36 = vmul.f32 %v315_v30, %v311_v17  ;;  %v323_v27 = vmul.f32 %v322_v32, %v311_v17 }
  0x71   :  { %v317_v37 = vadd.f32 1.0, %v316_v36  ;;  %v324_v39 = vadd.f32 1.0, %v323_v27 }
  0x73   :  { %v325_v23 = vmul.f32 %v324_v39, %v309_v14  ;;  %v334_v45 = vxor.u32 2147483648, %v317_v37 }
  0x75   :  { %v331_v0 = vxor.u32 2147483648, %v325_v23  ;;  %v335_v33 = vsel %vm333_vm0, %v334_v45, %v325_v23 }
  0x77   :  { %v332_v43 = vsel %vm330_vm1, %v317_v37, %v331_v0 }
  0x78   :  { %v336_v2 = vsel %vm329_vm2, %v332_v43, %v335_v33 }
  0x79   :  { %v337_v44 = vsel %vm326_vm3, nan, %v336_v2 }
  0x7a   :  { %v339_v38 = vsub.f32 %v337_v44, %v458_v1 }
  0x7c   :  { %v342_v46 = vmul.f32 %v340_v19, %v339_v38 }
  0x7e   :  { %344 = vst [vmem:[#allocation7 + $0x8] sm:$0xff] %v342_v46 }
  0x7f   :  { %355 = dma.vmem_to_hbm [thread:$0]  %s351_s15, 256, %s353_s18, [#allocation6]  }
  0x80   :  { %427 = dma.done.wait [#allocation6], 256  }
  0x81   :  { %428 = vsyncadd [#allocation6], 4294967040 }
  0x82   :  { %360 = vsyncpa [#allocation5], 1 }
  0x83   :  { %361 = vsyncpa [#allocation6], 1 }

</bundles_post_ra>
